<compile_context>
chip_gen: v6e
topology: v6e:2x2x1
jax: 0.10.0
libtpu: 0.0.40
codegen_flags: <defaults>
</compile_context>

<pallas_src>
import functools

import jax
import jax.numpy as jnp
from jax.experimental import pallas as pl
from jax.experimental.pallas import tpu as pltpu


def _sublane_multiple(dtype) -> int:
    """Minimum multiple for the second-to-last block dim (dtype sublane packing)."""
    itemsize = jnp.dtype(dtype).itemsize
    return {4: 8, 2: 16, 1: 32}.get(itemsize, 8)


def _fold_kernel(x_ref, o_ref, *, uc, UV, y_res, x_res, pad):
    """One (b, c-chunk, u-group) grid step.

    x_ref : (1, Ct, uc*y_res, W)        `uc` angular rows of the lenslet image
    o_ref : (1, Ct, uc, UV, Yc, Xc)     all angular columns v for those rows
    """
    Yc = y_res - 2 * pad
    Xc = x_res - 2 * pad
    # uc * UV is small (angular extent); static unroll -> contiguous slab copies.
    for ul in range(uc):
        y0 = ul * y_res + pad
        for v in range(UV):
            x0 = v * x_res + pad
            o_ref[0, :, ul, v, :, :] = x_ref[0, :, y0:y0 + Yc, x0:x0 + Xc]


def _pick_u_chunk(U, y_res, sub):
    """Smallest divisor uc of U such that uc*y_res is sublane-legal; else full H."""
    for uc in range(1, U + 1):
        if U % uc == 0 and (uc * y_res) % sub == 0:
            return uc
    return U  # full-extent H block: always a legal block shape


def _pick_c_chunk(C, per_channel_tile_bytes, budget_bytes):
    """Largest divisor of C whose double-buffered (in+out) tiles fit the budget."""
    for ct in range(C, 0, -1):
        if C % ct == 0 and 2 * ct * per_channel_tile_bytes <= budget_bytes:
            return ct
    return 1


def folding_subaperture_padd(x, UV_diameter, padding, *,
                             vmem_tile_budget_bytes=24 << 20):
    """Pallas implementation of FoldingSubaperturePadd.forward."""
    B, C, H, W = x.shape
    U = int(UV_diameter)
    pad = int(padding)

    # PyTorch's reshape would fail for non-divisible H/W; make that explicit.
    assert H % U == 0 and W % U == 0, (
        f"H ({H}) and W ({W}) must be divisible by UV_diameter ({U})")
    y_res = H // U
    x_res = W // U
    Yc = y_res - 2 * pad
    Xc = x_res - 2 * pad
    assert Yc > 0 and Xc > 0, "padding too large for the sub-aperture resolution"

    itemsize = jnp.dtype(x.dtype).itemsize
    out_shape = jax.ShapeDtypeStruct((B, C, U, U, Yc, Xc), x.dtype)

    sub = _sublane_multiple(x.dtype)
    uc = _pick_u_chunk(U, y_res, sub)          # angular rows per grid step
    per_channel = (uc * y_res * W + uc * U * Yc * Xc) * itemsize
    Ct = _pick_c_chunk(C, per_channel, vmem_tile_budget_bytes)

    grid = (B, C // Ct, U // uc)
    kernel = functools.partial(
        _fold_kernel, uc=uc, UV=U, y_res=y_res, x_res=x_res, pad=pad)

    # Input: H block index == u-group (element offset g*uc*y_res); W full extent
    # so the lane dim always satisfies the (8, 128) rule.
    in_specs = [pl.BlockSpec((1, Ct, uc * y_res, W),
                             lambda b, c, g: (b, c, g, 0))]
    # Output: block covers full trailing (Yc, Xc) dims (legal for any crop size).
    out_specs = pl.BlockSpec((1, Ct, uc, U, Yc, Xc),
                             lambda b, c, g: (b, c, g, 0, 0, 0))

    # Zero-FLOP relayout: advise XLA of the bytes it actually moves.
    cost = pl.CostEstimate(
        flops=0,
        transcendentals=0,
        bytes_accessed=(B * C * H * W + B * C * U * U * Yc * Xc) * itemsize,
    )

    return pl.pallas_call(
        kernel,
        out_shape=out_shape,
        grid=grid,
        in_specs=in_specs,
        out_specs=out_specs,
        compiler_params=pltpu.CompilerParams(
            dimension_semantics=("parallel", "parallel", "parallel"),
            # Generation-safe scoped-VMEM limit (< v7x's 64 MiB physical,
            # comfortably above the double-buffered tile budget used above).
            vmem_limit_bytes=48 << 20,
        ),
        cost_estimate=cost,
    )(x)


def _reference(x, UV_diameter, padding):
    """Pure-JAX mirror of the PyTorch forward, used for verification."""
    B, C, H, W = x.shape
    y_res = H // UV_diameter
    x_res = W // UV_diameter
    xr = x.reshape(B, C, UV_diameter, y_res, UV_diameter, x_res)
    xr = jnp.transpose(xr, (0, 1, 2, 4, 3, 5))
    return xr[:, :, :, :, padding:y_res - padding, padding:x_res - padding]


if __name__ == "__main__":
    key = jax.random.PRNGKey(0)

    # Case 1: uc = 1 path (y_res = 8 is sublane-aligned for f32).
    UV_diameter, padding = 2, 1
    B, C, H, W = 2, 4, 16, 16          # y_res = x_res = 8, cropped to 6x6
    x = jax.random.normal(key, (B, C, H, W), dtype=jnp.float32)
    out = jax.block_until_ready(folding_subaperture_padd(x, UV_diameter, padding))
    ref = _reference(x, UV_diameter, padding)
    assert out.shape == ref.shape, (out.shape, ref.shape)
    assert bool(jnp.array_equal(out, ref)), "Pallas kernel mismatch (uc=1 path)"

    # Case 2: uc = U fallback (y_res = 6 not sublane-aligned -> full-H blocks).
    x2 = jax.random.normal(jax.random.PRNGKey(0), (2, 3, 12, 12), dtype=jnp.float32)
    out2 = jax.block_until_ready(folding_subaperture_padd(x2, 2, 1))
    ref2 = _reference(x2, 2, 1)
    assert out2.shape == ref2.shape, (out2.shape, ref2.shape)
    assert bool(jnp.array_equal(out2, ref2)), "Pallas kernel mismatch (uc=U path)"

    # Case 3: intermediate u-grouping (y_res = 4, f32 -> uc = 2 of U = 4).
    x3 = jax.random.normal(jax.random.PRNGKey(0), (1, 2, 16, 16), dtype=jnp.float32)
    out3 = jax.block_until_ready(folding_subaperture_padd(x3, 4, 1))
    ref3 = _reference(x3, 4, 1)
    assert out3.shape == ref3.shape, (out3.shape, ref3.shape)
    assert bool(jnp.array_equal(out3, ref3)), "Pallas kernel mismatch (uc=2 path)"

    print("KERNEL_OK")
</pallas_src>

<mosaic_0001>
module attributes {stable_mosaic.version = 11 : i64} {
  func.func @_fold_kernel(%arg0: i32, %arg1: i32, %arg2: i32, %arg3: memref<1x4x8x16xf32, #tpu.memory_space<vmem>>, %arg4: memref<1x4x1x2x6x6xf32, #tpu.memory_space<vmem>>) attributes {dimension_semantics = [#tpu.dimension_semantics<parallel>, #tpu.dimension_semantics<parallel>, #tpu.dimension_semantics<parallel>], iteration_bounds = array<i64: 2, 1, 2>, scalar_prefetch = 0 : i64, scratch_operands = 0 : i64, tpu.core_type = #tpu.core_type<tc>, window_params = [{transform_indices = @transform_0, window_bounds = array<i64: 1, 4, 8, 16>}, {transform_indices = @transform_1, window_bounds = array<i64: 1, 4, 1, 2, 6, 6>}]} {
    %c0 = arith.constant 0 : index
    %c0_0 = arith.constant 0 : index
    %c1 = arith.constant 1 : index
    %c1_1 = arith.constant 1 : index
    %0 = vector.load %arg3[%c0, %c0_0, %c1, %c1_1] : memref<1x4x8x16xf32, #tpu.memory_space<vmem>>, vector<1x4x6x6xf32>
    %1 = vector.shape_cast %0 : vector<1x4x6x6xf32> to vector<4x6x6xf32>
    %c0_2 = arith.constant 0 : index
    %c0_3 = arith.constant 0 : index
    %c0_4 = arith.constant 0 : index
    %c0_5 = arith.constant 0 : index
    %c0_6 = arith.constant 0 : index
    %c0_7 = arith.constant 0 : index
    %2 = vector.load %arg4[%c0_2, %c0_3, %c0_4, %c0_5, %c0_6, %c0_7] : memref<1x4x1x2x6x6xf32, #tpu.memory_space<vmem>>, vector<1x4x1x1x6x6xf32>
    %3 = vector.shape_cast %2 : vector<1x4x1x1x6x6xf32> to vector<4x6x6xf32>
    %4 = vector.shape_cast %1 : vector<4x6x6xf32> to vector<1x4x1x1x6x6xf32>
    tpu.vector_store %arg4[%c0_2, %c0_3, %c0_4, %c0_5, %c0_6, %c0_7], %4 {strides = array<i32>} : memref<1x4x1x2x6x6xf32, #tpu.memory_space<vmem>>, vector<1x4x1x1x6x6xf32>,
    %c0_8 = arith.constant 0 : index
    %c0_9 = arith.constant 0 : index
    %c1_10 = arith.constant 1 : index
    %c9 = arith.constant 9 : index
    %5 = vector.load %arg3[%c0_8, %c0_9, %c1_10, %c9] : memref<1x4x8x16xf32, #tpu.memory_space<vmem>>, vector<1x4x6x6xf32>
    %6 = vector.shape_cast %5 : vector<1x4x6x6xf32> to vector<4x6x6xf32>
    %c0_11 = arith.constant 0 : index
    %c0_12 = arith.constant 0 : index
    %c0_13 = arith.constant 0 : index
    %c1_14 = arith.constant 1 : index
    %c0_15 = arith.constant 0 : index
    %c0_16 = arith.constant 0 : index
    %7 = vector.load %arg4[%c0_11, %c0_12, %c0_13, %c1_14, %c0_15, %c0_16] : memref<1x4x1x2x6x6xf32, #tpu.memory_space<vmem>>, vector<1x4x1x1x6x6xf32>
    %8 = vector.shape_cast %7 : vector<1x4x1x1x6x6xf32> to vector<4x6x6xf32>
    %9 = vector.shape_cast %6 : vector<4x6x6xf32> to vector<1x4x1x1x6x6xf32>
    tpu.vector_store %arg4[%c0_11, %c0_12, %c0_13, %c1_14, %c0_15, %c0_16], %9 {strides = array<i32>} : memref<1x4x1x2x6x6xf32, #tpu.memory_space<vmem>>, vector<1x4x1x1x6x6xf32>,
    return
  }
  func.func @transform_0(%arg0: i32, %arg1: i32, %arg2: i32) -> (i32, i32, i32, i32) {
    %c0_i32 = arith.constant 0 : i32
    %c0_i32_0 = arith.constant 0 : i32
    return %arg0, %arg1, %arg2, %c0_i32 : i32, i32, i32, i32
  }
  func.func @transform_1(%arg0: i32, %arg1: i32, %arg2: i32) -> (i32, i32, i32, i32, i32, i32) {
    %c0_i32 = arith.constant 0 : i32
    %c0_i32_0 = arith.constant 0 : i32
    %c0_i32_1 = arith.constant 0 : i32
    %c0_i32_2 = arith.constant 0 : i32
    return %arg0, %arg1, %arg2, %c0_i32, %c0_i32_0, %c0_i32_1 : i32, i32, i32, i32, i32, i32
  }
}

</mosaic_0001>

<bundles_post_ra>
// kernel: tpu_custom_call.1
= control target key start
LH: loop header
LB: loop body
LE: loop exit
PB: predicated region body
PF: predicated region fallthrough
CT: control target
= control target key end

     0   :  { %6 = vsyncpa [#allocation3], 0  ;;  %s724_s0 = inlined_call_operand.hbm [shape: f32[2,4,16,16], index: 0, kind: input, shape index: {}]   ;;  %s725_s1 = inlined_call_operand.vmem [shape: f32[2,4,2,2,6,6], index: 1, kind: output, shape index: {}]  }
   0x1   :  { %8 = vsyncpa [#allocation3 + $0x1], 0  ;;  %s583_s6 = smov 0   ;;  %s585_s7 = smov 0  }
   0x2   :  { %s587_s8 = smov 0   ;;  %s589_s9 = smov 0  }
   0x3   :  { %s591_s10 = smov 0   ;;  %s593_s11 = smov 0  }
   0x4   :  { %s595_s12 = smov 0   ;;  %s597_s13 = smov 0  }
   0x5 LB: > { %s375_s14 = sadd.s32 4294967295, %s565_s13   ;;  %s26_s15 = sadd.s32 1, %s557_s11  ;;  %s565_s13 = sphi %s597_s13, %s14_s13   ;;  %s561_s12 = sphi %s595_s12, %s736_s12   ;;  %s557_s11 = sphi %s593_s11, %s735_s11   ;;  %s553_s10 = sphi %s591_s10, %s734_s10   ;;  %s549_s9 = sphi %s589_s9, %s733_s9   ;;  %s545_s8 = sphi %s587_s8, %s732_s8   ;;  %s541_s7 = sphi %s585_s7, %s731_s7   ;;  %s537_s6 = sphi %s583_s6, %s730_s6  }
   0x6   : > { %p27_p0 = scmp.ge.s32.totalorder %s26_s15, 2  ;;  %s33_s16 = sadd.s32 1, %s561_s12 }
   0x7   : > { %s44_s17 = sadd.s32 1, %s545_s8  ;;  %p51_p1 = scmp.ne.s32.totalorder %s545_s8, %s541_s7 }
   0x8   : > { %s738_s15 = smov (%p27_p0, %s26_s15), 0  ;;  %s740_s16 = smov (!%p27_p0, %s33_s16), %s561_s12 }
   0x9   : > { %s40_s18 = ssub.s32 %s557_s11, %s738_s15  ;;  %p52_p2 = scmp.eq.s32.totalorder %s565_s13, 0 }
   0xa   : > { %p35_p3 = scmp.ge.s32.totalorder %s740_s16, 2  ;;  %p57_p4 = scmp.ne.s32.totalorder %s541_s7, %s537_s6 }
   0xb   : > { %p637_p5 = por %p52_p2, %p51_p1  ;;  %p58_p6 = scmp.eq.s32.totalorder %s375_s14, 0 }
   0xc   : > { %s742_s16 = smov (%p35_p3, %s740_s16), 0  ;;  %p85_p8 = scmp.eq.s32.totalorder %s375_s14, 3 }
   0xd   : > { %p643_p7 = por %p58_p6, %p57_p4  ;;  %s37_s21 = ssub.s32 %s561_s12, %s742_s16 }
   0xe   : > { %s41_s22 = sor.u32 %s40_s18, %s37_s21  ;;  %p652_p9 = por %p85_p8, %p51_p1 }
   0xf   : > { %p42_p10 = scmp.eq.s32.totalorder %s41_s22, 0  ;;  %p401_p11 = scmp.lt.s32.totalorder %s565_s13, 4 }
  0x10   : > { %s111_s24 = sand.u32 1, %s545_s8   ;;  %s380_s25 = sshll.u32 %s561_s12, 3 }
  0x11   : > { %s660_s26 = scalar_select %p42_p10, %s545_s8, %s44_s17  }
  0x12   : > { %s379_s27 = sshll.u32 %s111_s24, 5  ;;  %s123_s28 = sadd.s32 %s557_s11, %s380_s25 }
  0x13   : > { %s381_s29 = sshll.u32 %s123_s28, 7  ;;  %s115_s30 = scalar_lea.vmem [#allocation2], %s379_s27 }
  0x14   : > { %s126_s2 = sshll.u32 %s115_s30, 4  ;;  %s125_s5 = scalar_lea.hbm %s724_s0, %s381_s29  ;;  %s127_s2 = int_to_ptr.vmem [resolvable:$true] %s126_s2 }
  0x15   : > { %p668_p12 = pnand %p401_p11, %p637_p5  ;;  %p382_p13 = scmp.ge.s32.totalorder %s565_s13, 1 }
  0x16   : > { %s112_s14 = scalar_lea.sflag [#allocation3], %s111_s24  ;;  %s484_s17 = scalar_lea.vmem %s127_s2, 512 }
  0x17   : > { %p473_p0 = pneg %p668_p12  ;;  %p485_p1 = scmp.ne.s32.totalorder %s127_s2, %s484_s17 }
  0x18   : > { %s567_s18 = smov [#allocation2]  }
  0x19   : > { %p487_p2 = pnand %p485_p1, %p473_p0  ;;  %s489_s21 = sshll.u32 %s567_s18, 4  ;;  %s490_s21 = int_to_ptr.vmem [resolvable:$false] %s489_s21 }
  0x1a   : > { %s491_s22 = scalar_lea.vmem %s490_s21, 1024  ;;  %p492_p4 = scmp.lt.s32.totalorder %s127_s2, %s490_s21 }
  0x1b   : > { %p488_p3 = pneg %p487_p2  ;;  %p493_p6 = scmp.lt.s32.totalorder %s491_s22, %s484_s17 }
  0x1d   : > { %p494_p8 = por %p493_p6, %p492_p4 }
  0x1f   : > { %p495_p5 = pnand %p494_p8, %p488_p3 }
  0x21   : > { %498 = shalt.err (!%p495_p5)
}
  0x22   : > { %s568_s19 = smov 256   ;;  %s569_s24 = smov 128  }
  0x23   : > { %s570_s25 = smov 8   ;;  %p134_p10 = scmp.lt.s32.totalorder %s565_s13, 5 }
  0x24   : > { %400 = dma.hbm_to_vmem [thread:$0]  (!%p668_p12), %s125_s5, 512, %s127_s2, %s112_s14, %s568_s19, %s569_s24, %s570_s25  }
  0x25   : > { %p135_p11 = pnand %p382_p13, %p134_p10 }
  0x26   : > { %s140_s27 = sand.u32 (!%p135_p11), 1, %s541_s7  }
  0x27   : > { %138 = sbr.rel (%p135_p11) target bundleno = 182 (0xb6), region = 24  ;;  %s383_s28 = sshll.u32 (!%p135_p11), %s140_s27, 5 }
  0x28   : > { %s141_s29 = scalar_lea.sflag (!%p135_p11), [#allocation3], %s140_s27  ;;  %s144_s30 = scalar_lea.vmem (!%p135_p11), [#allocation2], %s383_s28 }
  0x2c   : > { %532 = dma.done.wait (%p643_p7), %s141_s29, 512  }
  0x2d   : > { %534 = vsyncadd (%p643_p7), %s141_s29, 4294966784  ;;  %v166_v0 = vld [vmem:[%s144_s30 + $0x11] sm:$0x3f]  ;;  %v164_v1 = vld [vmem:[%s144_s30 + $0x1] sm:$0x3f]  ;;  %s571_s3 = smov 127  }
  0x2e   : > { %176 = vrot.lane.b32.xlu1 %v166_v0, %s571_s3  ;;  %172 = vrot.lane.b32.xlu0 %v164_v1, %s571_s3  ;;  %v167_v2 = vld [vmem:[%s144_s30 + $0x19] sm:$0x3f]  ;;  %v165_v3 = vld [vmem:[%s144_s30 + $0x9] sm:$0x3f]  ;;  %s572_s2 = smov 119   ;;  %s384_s20 = sshll.u32 %s140_s27, 6 }
  0x2f   : > { %v190_v4 = vld [vmem:[%s144_s30 + $0x9] sm:$0x3f]  ;;  %v189_v5 = vld [vmem:[%s144_s30 + $0x1] sm:$0x3f]  ;;  %v192_v6 = vld [vmem:[%s144_s30 + $0x19] sm:$0x3f] }
  0x30   : > { %v191_v7 = vld [vmem:[%s144_s30 + $0x11] sm:$0x3f]  ;;  %vm184_vm0 = vcmask 46080   ;;  %s161_s4 = scalar_lea.vmem [#allocation4], %s384_s20  ;;  %s390_s5 = sshll.u32 (%p652_p9), %s549_s9, 1 }
  0x31   : > { %s391_s6 = sshll.u32 (%p652_p9), %s553_s10, 4 }
  0x32   : > { %178 = vrot.lane.b32.xlu1 %v167_v2, %s571_s3  ;;  %174 = vrot.lane.b32.xlu0 %v165_v3, %s571_s3  ;;  %s226_s14 = sadd.s32 (%p652_p9), %s391_s6, %s390_s5 }
  0x33   : > { %s392_s17 = sshll.u32 (%p652_p9), %s226_s14, 3 }
  0x34   : > { %s228_s22 = scalar_lea.vmem (%p652_p9), %s725_s1, %s392_s17 }
  0x36   : > { %199 = vrot.lane.b32.xlu1 %v190_v4, %s572_s2  ;;  %197 = vrot.lane.b32.xlu0 %v189_v5, %s572_s2 }
  0x3a   : > { %203 = vrot.lane.b32.xlu1 %v192_v6, %s572_s2  ;;  %201 = vrot.lane.b32.xlu0 %v191_v7, %s572_s2 }
  0xa0   : > { %v177_v8 = vpop.permute.xlu1 %176  ;;  %v173_v9 = vpop.permute.xlu0 %172 }
  0xa1   : > { %187 = vst.msk [vmem:[%s161_s4 + $0x20] sm:$0x3f] %vm184_vm0, %v177_v8  ;;  %185 = vst.msk [vmem:[%s161_s4] sm:$0x3f] %vm184_vm0, %v173_v9 }
  0xa4   : > { %v179_v10 = vpop.permute.xlu1 %178  ;;  %v175_v11 = vpop.permute.xlu0 %174 }
  0xa5   : > { %188 = vst.msk [vmem:[%s161_s4 + $0x30] sm:$0x3f] %vm184_vm0, %v179_v10  ;;  %186 = vst.msk [vmem:[%s161_s4 + $0x10] sm:$0x3f] %vm184_vm0, %v175_v11 }
  0xa8   : > { %v200_v12 = vpop.permute.xlu1 %199  ;;  %v198_v13 = vpop.permute.xlu0 %197  ;;  %v271_v16 = vld [vmem:[%s161_s4] sm:$0xff] (%p652_p9) }
  0xa9   : > { %386 = vst.msk [vmem:[%s161_s4 + $0x18] sm:$0x3f] %vm184_vm0, %v200_v12  ;;  %385 = vst.msk [vmem:[%s161_s4 + $0x8] sm:$0x3f] %vm184_vm0, %v198_v13  ;;  %220 = sbr.rel (!%p652_p9) target bundleno = 182 (0xb6), region = 32  ;;  %v279_v20 = vld [vmem:[%s161_s4 + $0x20] sm:$0xff] (%p652_p9) }
  0xaa   : > { %272 = vst [vmem:[%s228_s22] sm:$0xff] (%p652_p9), %v271_v16  ;;  %280 = vst [vmem:[%s228_s22 + $0x40] sm:$0xff] (%p652_p9), %v279_v20 }
  0xac   : > { %v204_v14 = vpop.permute.xlu1 %203  ;;  %v202_v15 = vpop.permute.xlu0 %201  ;;  %v275_v18 = vld [vmem:[%s161_s4 + $0x10] sm:$0xff] (%p652_p9) }
  0xad   : > { %388 = vst.msk [vmem:[%s161_s4 + $0x38] sm:$0x3f] %vm184_vm0, %v204_v14  ;;  %387 = vst.msk [vmem:[%s161_s4 + $0x28] sm:$0x3f] %vm184_vm0, %v202_v15  ;;  %v283_v22 = vld [vmem:[%s161_s4 + $0x30] sm:$0xff] (%p652_p9) }
  0xae   : > { %276 = vst [vmem:[%s228_s22 + $0x20] sm:$0xff] %v275_v18  ;;  %284 = vst [vmem:[%s228_s22 + $0x60] sm:$0xff] %v283_v22 }
  0xb0   : > { %v273_v17 = vld [vmem:[%s161_s4 + $0x8] sm:$0xff]  ;;  %v277_v19 = vld [vmem:[%s161_s4 + $0x18] sm:$0xff] }
  0xb1   : > { %274 = vst [vmem:[%s228_s22 + $0x8] sm:$0xff] %v273_v17  ;;  %278 = vst [vmem:[%s228_s22 + $0x28] sm:$0xff] %v277_v19 }
  0xb4   : > { %v281_v21 = vld [vmem:[%s161_s4 + $0x28] sm:$0xff]  ;;  %v285_v23 = vld [vmem:[%s161_s4 + $0x38] sm:$0xff] }
  0xb5   : > { %282 = vst [vmem:[%s228_s22 + $0x48] sm:$0xff] %v281_v21  ;;  %286 = vst [vmem:[%s228_s22 + $0x68] sm:$0xff] %v285_v23 }
  0xb6 PF: > { %s14_s13 = sadd.s32 1, %s565_s13   ;;  %s730_s6 = smov %s541_s7 }
  0xb7   : > { %p11_p7 = scmp.ge.s32.totalorder %s14_s13, 6   ;;  %s731_s7 = smov %s545_s8 }
  0xb8   : > { %s732_s8 = smov %s660_s26  ;;  %s733_s9 = smov %s557_s11 }
  0xb9   : > { %s734_s10 = smov %s561_s12  ;;  %s735_s11 = smov %s738_s15 }
  0xba   : > { %s736_s12 = smov %s742_s16  ;;  %13 = sbr.rel (!%p11_p7) target bundleno = 5 (0x5), region = 103 }
  0xbf   :  { %302 = vsyncpa [#allocation3], 1 }
  0xc0   :  { %304 = vsyncpa [#allocation3 + $0x1], 1 }

</bundles_post_ra>
